<compile_context>
chip_gen: v7x
topology: tpu7x:2x2x1
jax: 0.10.0
libtpu: 0.0.40
codegen_flags: <defaults>
</compile_context>

<pallas_src>
import functools

import jax
import jax.numpy as jnp
from jax.experimental import pallas as pl
from jax.experimental.pallas import tpu as pltpu


def _round_up(n, m):
    return ((n + m - 1) // m) * m


# ---------------------------------------------------------------------------
# Fused kernel:  feat = x @ W_feat + b_feat ;  (h', c') = LSTMCell(feat, h, c)
# ---------------------------------------------------------------------------
def _fused_rnn_kernel(x_ref, wf_ref, bf_ref, h_ref, c_ref,
                      wih_ref, whh_ref, bl_ref,
                      h_out_ref, c_out_ref, *, approx_sigmoid):
    mdt = wf_ref.dtype            # MXU input dtype (f32 or bf16); acc is f32

    def _sigmoid(v):
        if approx_sigmoid:
            # exp + approx reciprocal both land on the EUP slot (off the VALU).
            return pl.reciprocal(1.0 + jnp.exp(-v), approx=True)
        return jax.nn.sigmoid(v)

    # Feature / classifier head: stays in vregs/VMEM, never written to HBM.
    feat = jnp.dot(x_ref[...].astype(mdt), wf_ref[...],
                   preferred_element_type=jnp.float32) + bf_ref[...]

    # LSTM gates: [i | f | g | o], each H_pad (multiple of 128) lanes wide,
    # so the per-gate slices below are whole-vreg lane-aligned.
    gates = (
        jnp.dot(feat.astype(mdt), wih_ref[...],
                preferred_element_type=jnp.float32)
        + jnp.dot(h_ref[...].astype(mdt), whh_ref[...],
                  preferred_element_type=jnp.float32)
        + bl_ref[...]
    )

    hp = h_out_ref.shape[-1]
    i_g = _sigmoid(gates[:, 0 * hp:1 * hp])
    f_g = _sigmoid(gates[:, 1 * hp:2 * hp])
    g_g = jnp.tanh(gates[:, 2 * hp:3 * hp])
    o_g = _sigmoid(gates[:, 3 * hp:4 * hp])

    c_new = f_g * c_ref[...] + i_g * g_g
    h_new = o_g * jnp.tanh(c_new)

    h_out_ref[...] = h_new        # (tb, Hp) -> lane-dense, unmasked stores
    c_out_ref[...] = c_new


# ---------------------------------------------------------------------------
# Wrapper: pad to hardware tiles, single fused pallas_call, slice back.
# ---------------------------------------------------------------------------
def rnn_forward(x, hx, cx, params, *, mxu_dtype=jnp.float32,
                approx_sigmoid=False):
    """Mirrors RNN.forward: returns ((h_new, c_new), hx)."""
    B, f_in = x.shape
    _, hidden = hx.shape
    feat_dim = params["w_feat"].shape[1]

    # ---- pad to TPU-native tiles: 8 sublanes x 128 lanes -------------------
    bp = _round_up(B, 8)
    fp = _round_up(f_in, 128)
    dp = _round_up(feat_dim, 128)
    hp = _round_up(hidden, 128)

    def pad2(a, r, c):
        return jnp.pad(a, ((0, r - a.shape[0]), (0, c - a.shape[1])))

    xp = pad2(x, bp, fp)
    hxp = pad2(hx, bp, hp)
    cxp = pad2(cx, bp, hp)

    # NOTE: in production pre-pad / pre-cast the weights once outside the
    # step; done inline here to keep the example self-contained.
    w_feat = pad2(params["w_feat"], fp, dp).astype(mxu_dtype)
    b_feat = pad2(params["b_feat"], 1, dp)

    def pad_gates(w, rows):
        # (r, 4*hidden) -> (rows, 4*hp), padding each gate block independently
        # so gate k occupies lanes [k*hp, (k+1)*hp).
        w4 = w.reshape(w.shape[0], 4, hidden)
        w4 = jnp.pad(w4, ((0, rows - w.shape[0]), (0, 0), (0, hp - hidden)))
        return w4.reshape(rows, 4 * hp)

    w_ih = pad_gates(params["w_ih"], dp).astype(mxu_dtype)
    w_hh = pad_gates(params["w_hh"], hp).astype(mxu_dtype)
    b_lstm = pad_gates(params["b_lstm"], 1)

    tb = 8                         # batch tile (sublane aligned); bp % tb == 0
    grid = (bp // tb,)             # "parallel" -> megacore sharding on v7x

    flops = 2 * bp * (fp * dp + dp * 4 * hp + hp * 4 * hp)
    transcendentals = 5 * bp * hp  # 3 sigmoid + 2 tanh per (row, hidden) elem
    bytes_accessed = int(
        4 * (xp.size + hxp.size + cxp.size + b_feat.size + b_lstm.size
             + 2 * bp * hp)
        + w_feat.dtype.itemsize * w_feat.size
        + w_ih.dtype.itemsize * (w_ih.size + w_hh.size)
    )

    kernel = functools.partial(_fused_rnn_kernel,
                               approx_sigmoid=approx_sigmoid)

    h_pad, c_pad = pl.pallas_call(
        kernel,
        out_shape=(jax.ShapeDtypeStruct((bp, hp), jnp.float32),
                   jax.ShapeDtypeStruct((bp, hp), jnp.float32)),
        grid_spec=pltpu.PrefetchScalarGridSpec(
            num_scalar_prefetch=0,
            grid=grid,
            in_specs=[
                pl.BlockSpec((tb, fp), lambda i: (i, 0)),       # x
                pl.BlockSpec((fp, dp), lambda i: (0, 0)),       # w_feat (VMEM-resident)
                pl.BlockSpec((1, dp), lambda i: (0, 0)),        # b_feat
                pl.BlockSpec((tb, hp), lambda i: (i, 0)),       # hx
                pl.BlockSpec((tb, hp), lambda i: (i, 0)),       # cx
                pl.BlockSpec((dp, 4 * hp), lambda i: (0, 0)),   # w_ih (VMEM-resident)
                pl.BlockSpec((hp, 4 * hp), lambda i: (0, 0)),   # w_hh (VMEM-resident)
                pl.BlockSpec((1, 4 * hp), lambda i: (0, 0)),    # b_ih + b_hh
            ],
            out_specs=(
                pl.BlockSpec((tb, hp), lambda i: (i, 0)),       # h_new
                pl.BlockSpec((tb, hp), lambda i: (i, 0)),       # c_new
            ),
        ),
        compiler_params=pltpu.CompilerParams(
            dimension_semantics=("parallel",)),
        cost_estimate=pl.CostEstimate(
            flops=flops,
            transcendentals=transcendentals,
            bytes_accessed=bytes_accessed),
    )(xp, w_feat, b_feat, hxp, cxp, w_ih, w_hh, b_lstm)

    h_new = h_pad[:B, :hidden]
    c_new = c_pad[:B, :hidden]
    return (h_new, c_new), hx


# ---------------------------------------------------------------------------
# Deterministic parameter init (logical, unpadded shapes)
# ---------------------------------------------------------------------------
def init_params(key, f_in, feat_dim, hidden):
    ks = jax.random.split(key, 6)
    scale = 0.1
    # feature / classifier head: Linear(f_in -> feat_dim), stored (f_in, feat_dim)
    w_feat = scale * jax.random.normal(ks[0], (f_in, feat_dim), jnp.float32)
    b_feat = scale * jax.random.normal(ks[1], (1, feat_dim), jnp.float32)
    # LSTMCell weights, stored transposed: (feat_dim, 4H) and (H, 4H)
    w_ih = scale * jax.random.normal(ks[2], (feat_dim, 4 * hidden), jnp.float32)
    w_hh = scale * jax.random.normal(ks[3], (hidden, 4 * hidden), jnp.float32)
    # b = b_ih + b_hh combined
    b_lstm = scale * (
        jax.random.normal(ks[4], (1, 4 * hidden), jnp.float32)
        + jax.random.normal(ks[5], (1, 4 * hidden), jnp.float32)
    )
    return dict(w_feat=w_feat, b_feat=b_feat, w_ih=w_ih, w_hh=w_hh, b_lstm=b_lstm)


# ---------------------------------------------------------------------------
# Pure-JAX reference for correctness check
# ---------------------------------------------------------------------------
def rnn_forward_ref(x, hx, cx, p):
    feat = x @ p["w_feat"] + p["b_feat"]
    gates = feat @ p["w_ih"] + hx @ p["w_hh"] + p["b_lstm"]
    H = hx.shape[-1]
    i = jax.nn.sigmoid(gates[:, 0 * H:1 * H])
    f = jax.nn.sigmoid(gates[:, 1 * H:2 * H])
    g = jnp.tanh(gates[:, 2 * H:3 * H])
    o = jax.nn.sigmoid(gates[:, 3 * H:4 * H])
    c_new = f * cx + i * g
    h_new = o * jnp.tanh(c_new)
    return (h_new, c_new), hx


if __name__ == "__main__":
    B, F_IN, FEAT, HIDDEN = 2, 64, 32, 32

    key = jax.random.PRNGKey(0)
    k_x, k_h, k_c, k_p = jax.random.split(key, 4)

    x = jax.random.normal(k_x, (B, F_IN), jnp.float32)
    hx = jax.random.normal(k_h, (B, HIDDEN), jnp.float32)
    cx = jax.random.normal(k_c, (B, HIDDEN), jnp.float32)
    params = init_params(k_p, F_IN, FEAT, HIDDEN)

    (h_ref, c_ref), _ = rnn_forward_ref(x, hx, cx, params)

    # Precise path: f32 MXU inputs, exact sigmoid.
    (h_new, c_new), hx_out = rnn_forward(x, hx, cx, params)
    jax.block_until_ready((h_new, c_new, hx_out))
    assert jnp.allclose(h_new, h_ref, atol=1e-4, rtol=1e-4), "h mismatch (f32)"
    assert jnp.allclose(c_new, c_ref, atol=1e-4, rtol=1e-4), "c mismatch (f32)"
    assert jnp.allclose(hx_out, hx), "hx passthrough mismatch"

    # Fast path (v6e/v7x): bf16 MXU inputs (f32 acc) + EUP approx-reciprocal
    # sigmoid; elementwise gate math stays f32.
    (h_fast, c_fast), _ = rnn_forward(
        x, hx, cx, params, mxu_dtype=jnp.bfloat16, approx_sigmoid=True)
    jax.block_until_ready((h_fast, c_fast))
    assert jnp.allclose(h_fast, h_ref, atol=5e-2, rtol=5e-2), "h mismatch (bf16)"
    assert jnp.allclose(c_fast, c_ref, atol=5e-2, rtol=5e-2), "c mismatch (bf16)"

    print("KERNEL_OK")
</pallas_src>

<mosaic_0001>
module attributes {stable_mosaic.version = 11 : i64} {
  func.func @_fused_rnn_kernel(%arg0: i32, %arg1: memref<8x128xf32, #tpu.memory_space<vmem>>, %arg2: memref<128x128xf32, #tpu.memory_space<vmem>>, %arg3: memref<1x128xf32, #tpu.memory_space<vmem>>, %arg4: memref<8x128xf32, #tpu.memory_space<vmem>>, %arg5: memref<8x128xf32, #tpu.memory_space<vmem>>, %arg6: memref<128x512xf32, #tpu.memory_space<vmem>>, %arg7: memref<128x512xf32, #tpu.memory_space<vmem>>, %arg8: memref<1x512xf32, #tpu.memory_space<vmem>>, %arg9: memref<8x128xf32, #tpu.memory_space<vmem>>, %arg10: memref<8x128xf32, #tpu.memory_space<vmem>>) attributes {dimension_semantics = [#tpu.dimension_semantics<parallel>], iteration_bounds = array<i64: 1>, scalar_prefetch = 0 : i64, scratch_operands = 0 : i64, tpu.core_type = #tpu.core_type<tc>, window_params = [{transform_indices = @transform_0, window_bounds = array<i64: 8, 128>}, {pipeline_mode = #tpu.pipeline_mode<synchronous>, transform_indices = @transform_1, window_bounds = array<i64: 128, 128>}, {pipeline_mode = #tpu.pipeline_mode<synchronous>, transform_indices = @transform_2, window_bounds = array<i64: 1, 128>}, {transform_indices = @transform_3, window_bounds = array<i64: 8, 128>}, {transform_indices = @transform_4, window_bounds = array<i64: 8, 128>}, {pipeline_mode = #tpu.pipeline_mode<synchronous>, transform_indices = @transform_5, window_bounds = array<i64: 128, 512>}, {pipeline_mode = #tpu.pipeline_mode<synchronous>, transform_indices = @transform_6, window_bounds = array<i64: 128, 512>}, {pipeline_mode = #tpu.pipeline_mode<synchronous>, transform_indices = @transform_7, window_bounds = array<i64: 1, 512>}, {transform_indices = @transform_8, window_bounds = array<i64: 8, 128>}, {transform_indices = @transform_9, window_bounds = array<i64: 8, 128>}]} {
    %c0 = arith.constant 0 : index
    %c0_0 = arith.constant 0 : index
    %0 = vector.load %arg1[%c0, %c0_0] : memref<8x128xf32, #tpu.memory_space<vmem>>, vector<8x128xf32>
    %c0_1 = arith.constant 0 : index
    %c0_2 = arith.constant 0 : index
    %1 = vector.load %arg2[%c0_1, %c0_2] : memref<128x128xf32, #tpu.memory_space<vmem>>, vector<128x128xf32>
    %cst = arith.constant dense<0.000000e+00> : vector<8x128xf32>
    %2 = tpu.matmul %0, %1, %cst {dimension_numbers = #tpu.dot_dimension_numbers<[1], [0], [0], [1], [0, 0, 1, 1], [], []>} : vector<8x128xf32>, vector<128x128xf32>, vector<8x128xf32> -> vector<8x128xf32>
    %c0_3 = arith.constant 0 : index
    %c0_4 = arith.constant 0 : index
    %3 = vector.load %arg3[%c0_3, %c0_4] : memref<1x128xf32, #tpu.memory_space<vmem>>, vector<1x128xf32>
    %4 = vector.broadcast %3 : vector<1x128xf32> to vector<8x128xf32>
    %5 = arith.addf %2, %4 : vector<8x128xf32>
    %c0_5 = arith.constant 0 : index
    %c0_6 = arith.constant 0 : index
    %6 = vector.load %arg6[%c0_5, %c0_6] : memref<128x512xf32, #tpu.memory_space<vmem>>, vector<128x512xf32>
    %cst_7 = arith.constant dense<0.000000e+00> : vector<8x512xf32>
    %7 = tpu.matmul %5, %6, %cst_7 {dimension_numbers = #tpu.dot_dimension_numbers<[1], [0], [0], [1], [0, 0, 1, 1], [], []>} : vector<8x128xf32>, vector<128x512xf32>, vector<8x512xf32> -> vector<8x512xf32>
    %c0_8 = arith.constant 0 : index
    %c0_9 = arith.constant 0 : index
    %8 = vector.load %arg4[%c0_8, %c0_9] : memref<8x128xf32, #tpu.memory_space<vmem>>, vector<8x128xf32>
    %c0_10 = arith.constant 0 : index
    %c0_11 = arith.constant 0 : index
    %9 = vector.load %arg7[%c0_10, %c0_11] : memref<128x512xf32, #tpu.memory_space<vmem>>, vector<128x512xf32>
    %cst_12 = arith.constant dense<0.000000e+00> : vector<8x512xf32>
    %10 = tpu.matmul %8, %9, %cst_12 {dimension_numbers = #tpu.dot_dimension_numbers<[1], [0], [0], [1], [0, 0, 1, 1], [], []>} : vector<8x128xf32>, vector<128x512xf32>, vector<8x512xf32> -> vector<8x512xf32>
    %11 = arith.addf %7, %10 : vector<8x512xf32>
    %c0_13 = arith.constant 0 : index
    %c0_14 = arith.constant 0 : index
    %12 = vector.load %arg8[%c0_13, %c0_14] : memref<1x512xf32, #tpu.memory_space<vmem>>, vector<1x512xf32>
    %13 = vector.broadcast %12 : vector<1x512xf32> to vector<8x512xf32>
    %14 = arith.addf %11, %13 : vector<8x512xf32>
    %15 = vector.extract_strided_slice %14 {offsets = [0, 0], sizes = [8, 128], strides = [1, 1]} : vector<8x512xf32> to vector<8x128xf32>
    %16 = arith.negf %15 : vector<8x128xf32>
    %17 = math.exp %16 : vector<8x128xf32>
    %cst_15 = arith.constant 1.000000e+00 : f32
    %18 = vector.broadcast %cst_15 : f32 to vector<8x128xf32>
    %19 = arith.addf %18, %17 : vector<8x128xf32>
    %20 = arith.divf %18, %19 : vector<8x128xf32>
    %21 = vector.extract_strided_slice %14 {offsets = [0, 128], sizes = [8, 128], strides = [1, 1]} : vector<8x512xf32> to vector<8x128xf32>
    %22 = arith.negf %21 : vector<8x128xf32>
    %23 = math.exp %22 : vector<8x128xf32>
    %cst_16 = arith.constant 1.000000e+00 : f32
    %24 = vector.broadcast %cst_16 : f32 to vector<8x128xf32>
    %25 = arith.addf %24, %23 : vector<8x128xf32>
    %26 = arith.divf %24, %25 : vector<8x128xf32>
    %27 = vector.extract_strided_slice %14 {offsets = [0, 256], sizes = [8, 128], strides = [1, 1]} : vector<8x512xf32> to vector<8x128xf32>
    %28 = math.tanh %27 : vector<8x128xf32>
    %29 = vector.extract_strided_slice %14 {offsets = [0, 384], sizes = [8, 128], strides = [1, 1]} : vector<8x512xf32> to vector<8x128xf32>
    %30 = arith.negf %29 : vector<8x128xf32>
    %31 = math.exp %30 : vector<8x128xf32>
    %cst_17 = arith.constant 1.000000e+00 : f32
    %32 = vector.broadcast %cst_17 : f32 to vector<8x128xf32>
    %33 = arith.addf %32, %31 : vector<8x128xf32>
    %34 = arith.divf %32, %33 : vector<8x128xf32>
    %c0_18 = arith.constant 0 : index
    %c0_19 = arith.constant 0 : index
    %35 = vector.load %arg5[%c0_18, %c0_19] : memref<8x128xf32, #tpu.memory_space<vmem>>, vector<8x128xf32>
    %36 = arith.mulf %26, %35 : vector<8x128xf32>
    %37 = arith.mulf %20, %28 : vector<8x128xf32>
    %38 = arith.addf %36, %37 : vector<8x128xf32>
    %39 = math.tanh %38 : vector<8x128xf32>
    %40 = arith.mulf %34, %39 : vector<8x128xf32>
    %c0_20 = arith.constant 0 : index
    %c0_21 = arith.constant 0 : index
    %41 = vector.load %arg9[%c0_20, %c0_21] : memref<8x128xf32, #tpu.memory_space<vmem>>, vector<8x128xf32>
    tpu.vector_store %arg9[%c0_20, %c0_21], %40 {strides = array<i32>} : memref<8x128xf32, #tpu.memory_space<vmem>>, vector<8x128xf32>,
    %c0_22 = arith.constant 0 : index
    %c0_23 = arith.constant 0 : index
    %42 = vector.load %arg10[%c0_22, %c0_23] : memref<8x128xf32, #tpu.memory_space<vmem>>, vector<8x128xf32>
    tpu.vector_store %arg10[%c0_22, %c0_23], %38 {strides = array<i32>} : memref<8x128xf32, #tpu.memory_space<vmem>>, vector<8x128xf32>,
    return
  }
  func.func @transform_0(%arg0: i32) -> (i32, i32) {
    %c0_i32 = arith.constant 0 : i32
    %c0_i32_0 = arith.constant 0 : i32
    return %arg0, %c0_i32 : i32, i32
  }
  func.func @transform_1(%arg0: i32) -> (i32, i32) {
    %c0_i32 = arith.constant 0 : i32
    %c0_i32_0 = arith.constant 0 : i32
    %c0_i32_1 = arith.constant 0 : i32
    return %c0_i32, %c0_i32_0 : i32, i32
  }
  func.func @transform_2(%arg0: i32) -> (i32, i32) {
    %c0_i32 = arith.constant 0 : i32
    %c0_i32_0 = arith.constant 0 : i32
    %c0_i32_1 = arith.constant 0 : i32
    return %c0_i32, %c0_i32_0 : i32, i32
  }
  func.func @transform_3(%arg0: i32) -> (i32, i32) {
    %c0_i32 = arith.constant 0 : i32
    %c0_i32_0 = arith.constant 0 : i32
    return %arg0, %c0_i32 : i32, i32
  }
  func.func @transform_4(%arg0: i32) -> (i32, i32) {
    %c0_i32 = arith.constant 0 : i32
    %c0_i32_0 = arith.constant 0 : i32
    return %arg0, %c0_i32 : i32, i32
  }
  func.func @transform_5(%arg0: i32) -> (i32, i32) {
    %c0_i32 = arith.constant 0 : i32
    %c0_i32_0 = arith.constant 0 : i32
    %c0_i32_1 = arith.constant 0 : i32
    return %c0_i32, %c0_i32_0 : i32, i32
  }
  func.func @transform_6(%arg0: i32) -> (i32, i32) {
    %c0_i32 = arith.constant 0 : i32
    %c0_i32_0 = arith.constant 0 : i32
    %c0_i32_1 = arith.constant 0 : i32
    return %c0_i32, %c0_i32_0 : i32, i32
  }
  func.func @transform_7(%arg0: i32) -> (i32, i32) {
    %c0_i32 = arith.constant 0 : i32
    %c0_i32_0 = arith.constant 0 : i32
    %c0_i32_1 = arith.constant 0 : i32
    return %c0_i32, %c0_i32_0 : i32, i32
  }
  func.func @transform_8(%arg0: i32) -> (i32, i32) {
    %c0_i32 = arith.constant 0 : i32
    %c0_i32_0 = arith.constant 0 : i32
    return %arg0, %c0_i32 : i32, i32
  }
  func.func @transform_9(%arg0: i32) -> (i32, i32) {
    %c0_i32 = arith.constant 0 : i32
    %c0_i32_0 = arith.constant 0 : i32
    return %arg0, %c0_i32 : i32, i32
  }
}

</mosaic_0001>

<bundles_post_ra>
// kernel: tpu_custom_call.1
= control target key start
LH: loop header
LB: loop body
LE: loop exit
PB: predicated region body
PF: predicated region fallthrough
CT: control target
= control target key end

     0   :  { %15 = vsyncpa [#allocation3], 0  ;;  %s1274_s0 = inlined_call_operand.hbm [shape: f32[8,128], index: 0, kind: input, shape index: {}]   ;;  %s1275_s1 = inlined_call_operand.hbm [shape: f32[128,128], index: 1, kind: input, shape index: {}]   ;;  %s1276_s2 = inlined_call_operand.vmem [shape: f32[1,128], index: 2, kind: input, shape index: {}]   ;;  %s1277_s3 = inlined_call_operand.vmem [shape: f32[8,128], index: 3, kind: input, shape index: {}]   ;;  %s1278_s4 = inlined_call_operand.hbm [shape: f32[8,128], index: 4, kind: input, shape index: {}]   ;;  %s1279_s5 = inlined_call_operand.hbm [shape: f32[128,512], index: 5, kind: input, shape index: {}]   ;;  %s1280_s6 = inlined_call_operand.hbm [shape: f32[128,512], index: 6, kind: input, shape index: {}]   ;;  %s1281_s7 = inlined_call_operand.vmem [shape: f32[1,512], index: 7, kind: input, shape index: {}]   ;;  %s1282_s8 = inlined_call_operand.hbm [shape: f32[8,128], index: 8, kind: output, shape index: {0}]   ;;  %s1283_s9 = inlined_call_operand.hbm [shape: f32[8,128], index: 9, kind: output, shape index: {1}]  }
   0x1   :  { %16 = vsyncpa [#allocation6], 0 }
   0x2   :  { %17 = vsyncpa [#allocation9], 0 }
   0x3   :  { %18 = vsyncpa [#allocation4], 0 }
   0x4   :  { %19 = vsyncpa [#allocation13], 0  ;;  %s1094_s30 = smov [#allocation5]   ;;  %s930_s13 = scalar_lea.hbm %s1275_s1, 2048 }
   0x5   :  { %s35_s10 = sshll.u32 %s1094_s30, 4  ;;  %p931_p0 = scmp.ne.s32.totalorder %s1275_s1, %s930_s13  ;;  %s36_s10 = int_to_ptr.vmem [resolvable:$true] %s35_s10 }
   0x6   :  { %p934_p1 = scmp.lt.u32.totalorder %s930_s13, %s1275_s1 }
   0x8   :  { %p936_p2 = pnand %p934_p1, %p931_p0 }
   0xa   :  { %939 = shalt.err (!%p936_p2)
}
   0xb   :  { %s940_s18 = scalar_lea.vmem %s36_s10, 2048  ;;  %p945_p4 = scmp.lt.s32.totalorder %s36_s10, %s36_s10 }
   0xc   :  { %p941_p3 = scmp.ne.s32.totalorder %s36_s10, %s940_s18  ;;  %p946_p5 = scmp.lt.s32.totalorder %s940_s18, %s940_s18 }
   0xe   :  { %p947_p6 = por %p946_p5, %p945_p4 }
  0x10   :  { %p948_p7 = pnand %p947_p6, %p941_p3 }
  0x12   :  { %951 = shalt.err (!%p948_p7)
}
  0x13   :  { %s1095_s19 = smov 128   ;;  %s1096_s20 = smov 8  }
  0x14   :  { %41 = dma.hbm_to_vmem [thread:$0]  %s1275_s1, 2048, %s36_s10, [#allocation6], %s1095_s19, %s1095_s19, %s1096_s20  }
  0x15   :  { %s1097_s23 = smov [#allocation8]   ;;  %s952_s27 = scalar_lea.hbm %s1279_s5, 8192 }
  0x16   :  { %s61_s24 = sshll.u32 %s1097_s23, 4  ;;  %p953_p8 = scmp.ne.s32.totalorder %s1279_s5, %s952_s27  ;;  %s62_s24 = int_to_ptr.vmem [resolvable:$true] %s61_s24 }
  0x17   :  { %p956_p9 = scmp.lt.u32.totalorder %s952_s27, %s1279_s5 }
  0x19   :  { %p958_p10 = pnand %p956_p9, %p953_p8 }
  0x1b   :  { %961 = shalt.err (!%p958_p10)
}
  0x1c   :  { %s962_s12 = scalar_lea.vmem %s62_s24, 8192  ;;  %p967_p12 = scmp.lt.s32.totalorder %s62_s24, %s62_s24 }
  0x1d   :  { %p963_p11 = scmp.ne.s32.totalorder %s62_s24, %s962_s12  ;;  %p968_p13 = scmp.lt.s32.totalorder %s962_s12, %s962_s12 }
  0x1f   :  { %p969_p0 = por %p968_p13, %p967_p12 }
  0x21   :  { %p970_p1 = pnand %p969_p0, %p963_p11 }
  0x23   :  { %973 = shalt.err (!%p970_p1)
}
  0x24   :  { %s1098_s1 = smov 512   ;;  %s1099_s10 = smov 32  }
  0x25   :  { %67 = dma.hbm_to_vmem [thread:$0]  %s1279_s5, 8192, %s62_s24, [#allocation9], %s1098_s1, %s1098_s1, %s1099_s10  }
  0x26   :  { %s1100_s15 = smov [#allocation2]   ;;  %s1101_s17 = smov [#allocation7]  }
  0x27   :  { %s26_s16 = sshll.u32 %s1100_s15, 4  ;;  %s52_s18 = sshll.u32 %s1101_s17, 4  ;;  %s27_s16 = int_to_ptr.vmem [resolvable:$true] %s26_s16  ;;  %s53_s18 = int_to_ptr.vmem [resolvable:$true] %s52_s18 }
  0x28   :  { %s974_s21 = scalar_lea.hbm %s1274_s0, 128 }
  0x29   :  { %p975_p2 = scmp.ne.s32.totalorder %s1274_s0, %s974_s21  ;;  %p978_p3 = scmp.lt.u32.totalorder %s974_s21, %s1274_s0 }
  0x2b   :  { %p980_p4 = pnand %p978_p3, %p975_p2 }
  0x2d   :  { %983 = shalt.err (!%p980_p4)
}
  0x2e   :  { %s984_s5 = scalar_lea.vmem %s27_s16, 128  ;;  %p989_p6 = scmp.lt.s32.totalorder %s27_s16, %s27_s16 }
  0x2f   :  { %p985_p5 = scmp.ne.s32.totalorder %s27_s16, %s984_s5  ;;  %p990_p7 = scmp.lt.s32.totalorder %s984_s5, %s984_s5 }
  0x31   :  { %p991_p8 = por %p990_p7, %p989_p6 }
  0x33   :  { %p992_p9 = pnand %p991_p8, %p985_p5 }
  0x35   :  { %995 = shalt.err (!%p992_p9)
}
  0x36   :  { %29 = dma.hbm_to_vmem [thread:$0]  %s1274_s0, 128, %s27_s16, [#allocation3]  }
  0x37   :  { %s996_s30 = scalar_lea.hbm %s1278_s4, 128 }
  0x38   :  { %p997_p10 = scmp.ne.s32.totalorder %s1278_s4, %s996_s30  ;;  %p1000_p11 = scmp.lt.u32.totalorder %s996_s30, %s1278_s4 }
  0x3a   :  { %p1002_p12 = pnand %p1000_p11, %p997_p10 }
  0x3c   :  { %1005 = shalt.err (!%p1002_p12)
}
  0x3d   :  { %s1006_s15 = scalar_lea.vmem %s53_s18, 128  ;;  %p1011_p0 = scmp.lt.s32.totalorder %s53_s18, %s53_s18 }
  0x3e   :  { %p1007_p13 = scmp.ne.s32.totalorder %s53_s18, %s1006_s15  ;;  %p1012_p1 = scmp.lt.s32.totalorder %s1006_s15, %s1006_s15 }
  0x40   :  { %p1013_p2 = por %p1012_p1, %p1011_p0 }
  0x42   :  { %p1014_p3 = pnand %p1013_p2, %p1007_p13 }
  0x44   :  { %1017 = shalt.err (!%p1014_p3)
}
  0x45   :  { %55 = dma.hbm_to_vmem [thread:$0]  %s1278_s4, 128, %s53_s18, [#allocation6]  }
  0x46   :  { %s1102_s17 = smov [#allocation10]   ;;  %s1018_s22 = scalar_lea.hbm %s1280_s6, 8192 }
  0x47   :  { %s73_s19 = sshll.u32 %s1102_s17, 4  ;;  %p1019_p4 = scmp.ne.s32.totalorder %s1280_s6, %s1018_s22  ;;  %s74_s19 = int_to_ptr.vmem [resolvable:$true] %s73_s19 }
  0x48   :  { %p1022_p5 = scmp.lt.u32.totalorder %s1018_s22, %s1280_s6 }
  0x4a   :  { %p1024_p6 = pnand %p1022_p5, %p1019_p4 }
  0x4c   :  { %1027 = shalt.err (!%p1024_p6)
}
  0x4d   :  { %s1028_s24 = scalar_lea.vmem %s74_s19, 8192  ;;  %p1033_p8 = scmp.lt.s32.totalorder %s74_s19, %s74_s19 }
  0x4e   :  { %p1029_p7 = scmp.ne.s32.totalorder %s74_s19, %s1028_s24  ;;  %p1034_p9 = scmp.lt.s32.totalorder %s1028_s24, %s1028_s24 }
  0x50   :  { %p1035_p10 = por %p1034_p9, %p1033_p8 }
  0x52   :  { %p1036_p11 = pnand %p1035_p10, %p1029_p7 }
  0x54   :  { %1039 = shalt.err (!%p1036_p11)
}
  0x55   :  { %79 = dma.hbm_to_vmem [thread:$0]  %s1280_s6, 8192, %s74_s19, [#allocation9], %s1098_s1, %s1098_s1, %s1099_s10  }
  0x56   :  { %1084 = dma.done.wait [#allocation3], 128  }
  0x57   :  { %1085 = vsyncadd [#allocation3], 4294967168 }
  0x58   :  { %1086 = dma.done.wait [#allocation6], 2176  }
  0x59   :  { %1087 = vsyncadd [#allocation6], 4294965120 }
  0x5a   :  { %1088 = dma.done.wait [#allocation9], 16384  }
  0x5b   :  { %1089 = vsyncadd [#allocation9], 4294950912  ;;  %v1103_v0 = vmov 0.0|0.0   ;;  %vm1104_vm0 = vmmov 0   ;;  %v1105_v1 = vmov 0.0   ;;  %v98_v2 = vld [vmem:[#allocation5] sm:$0xff] }
  0x5c   :  { %744 = vmatprep.subr.bf16.mxu0 %v1103_v0  ;;  %741 = vmatprep.mubr.msk.f32.mxu0 %vm1104_vm0, %v1105_v1  ;;  %v99_v3 = vld [vmem:[#allocation5 + $0x8] sm:$0xff]  ;;  %v100_v4 = vld [vmem:[#allocation5 + $0x10] sm:$0xff]  ;;  %v101_v6 = vld [vmem:[#allocation5 + $0x18] sm:$0xff] }
  0x5d   :  { %384 = vmatprep.mubr.f32.mxu1 %v1105_v1  ;;  %v745_v5 = vpack.c.bf16 %v99_v3, %v98_v2  ;;  %v748_v7 = vpack.c.bf16 %v101_v6, %v100_v4  ;;  %v102_v8 = vld [vmem:[#allocation5 + $0x20] sm:$0xff]  ;;  %v103_v9 = vld [vmem:[#allocation5 + $0x28] sm:$0xff]  ;;  %v257_v10 = vld [vmem:[#allocation10 + $0x8] sm:$0xff] }
  0x5e   :  { %v261_v11 = vld [vmem:[#allocation10 + $0x28] sm:$0xff]  ;;  %v751_v12 = vpack.c.bf16 %v103_v9, %v102_v8  ;;  %v256_v15 = vld [vmem:[#allocation10] sm:$0xff]  ;;  %v105_v17 = vld [vmem:[#allocation5 + $0x38] sm:$0xff] }
  0x5f   :  { %746 = vmatpush3.bf16.msra.mxu0 %v745_v5  ;;  %v104_v13 = vld [vmem:[#allocation5 + $0x30] sm:$0xff]  ;;  %v768_v14 = vpack.c.bf16 %v261_v11, %v257_v10  ;;  %v260_v16 = vld [vmem:[#allocation10 + $0x20] sm:$0xff]  ;;  %v106_v25 = vld [vmem:[#allocation5 + $0x40] sm:$0xff] }
  0x60   :  { %747 = vmatprep.subr.bf16.mxu0 %v1103_v0  ;;  %v770_v18 = vpack.c.bf16 %v260_v16, %v256_v15  ;;  %v265_v19 = vld [vmem:[#allocation10 + $0x48] sm:$0xff]  ;;  %v264_v22 = vld [vmem:[#allocation10 + $0x40] sm:$0xff]  ;;  %v754_v24 = vpack.c.bf16 %v105_v17, %v104_v13  ;;  %v109_v41 = vld [vmem:[#allocation5 + $0x58] sm:$0xff] }
  0x61   :  { %v269_v20 = vld [vmem:[#allocation10 + $0x68] sm:$0xff]  ;;  %769 = vmatprep.subr.bf16.mxu1 %v768_v14  ;;  %v268_v23 = vld [vmem:[#allocation10 + $0x60] sm:$0xff]  ;;  %v110_v46 = vld [vmem:[#allocation5 + $0x60] sm:$0xff] }
  0x62   :  { %v772_v21 = vpack.c.bf16 %v269_v20, %v265_v19  ;;  %771 = vmatpush1.bf16.msra.mxu1 %v770_v18  ;;  %v774_v26 = vpack.c.bf16 %v268_v23, %v264_v22  ;;  %v273_v27 = vld [vmem:[#allocation10 + $0x88] sm:$0xff]  ;;  %v107_v29 = vld [vmem:[#allocation5 + $0x48] sm:$0xff]  ;;  %v113_v59 = vld [vmem:[#allocation5 + $0x78] sm:$0xff] }
  0x63   :  { %749 = vmatpush3.bf16.msra.mxu0 %v748_v7  ;;  %v277_v28 = vld [vmem:[#allocation10 + $0xa8] sm:$0xff]  ;;  %v272_v31 = vld [vmem:[#allocation10 + $0x80] sm:$0xff]  ;;  %v757_v36 = vpack.c.bf16 %v107_v29, %v106_v25  ;;  %v259_v62 = vld [vmem:[#allocation10 + $0x18] sm:$0xff] }
  0x64   :  { %750 = vmatprep.subr.bf16.mxu0 %v1103_v0  ;;  %773 = vmatprep.subr.bf16.mxu1 %v772_v21  ;;  %v776_v30 = vpack.c.bf16 %v277_v28, %v273_v27  ;;  %v276_v32 = vld [vmem:[#allocation10 + $0xa0] sm:$0xff]  ;;  %v281_v33 = vld [vmem:[#allocation10 + $0xc8] sm:$0xff]  ;;  %v263_v63 = vld [vmem:[#allocation10 + $0x38] sm:$0xff] }
  0x65   :  { %v778_v34 = vpack.c.bf16 %v276_v32, %v272_v31  ;;  %v285_v35 = vld [vmem:[#allocation10 + $0xe8] sm:$0xff]  ;;  %v280_v39 = vld [vmem:[#allocation10 + $0xc0] sm:$0xff]  ;;  %v258_v4 = vld [vmem:[#allocation10 + $0x10] sm:$0xff]  ;;  %v800_v8 = vpack.c.bf16 %v263_v63, %v259_v62 }
  0x66   :  { %775 = vmatpush1.bf16.msra.mxu1 %v774_v26  ;;  %v108_v37 = vld [vmem:[#allocation5 + $0x50] sm:$0xff]  ;;  %v780_v38 = vpack.c.bf16 %v285_v35, %v281_v33  ;;  %v284_v40 = vld [vmem:[#allocation10 + $0xe0] sm:$0xff]  ;;  %v262_v9 = vld [vmem:[#allocation10 + $0x30] sm:$0xff] }
  0x67   :  { %752 = vmatpush3.bf16.msra.mxu0 %v751_v12  ;;  %777 = vmatprep.subr.bf16.mxu1 %v776_v30  ;;  %v289_v42 = vld [vmem:[#allocation10 + $0x108] sm:$0xff]  ;;  %v782_v44 = vpack.c.bf16 %v284_v40, %v280_v39  ;;  %v760_v45 = vpack.c.bf16 %v109_v41, %v108_v37  ;;  %v288_v48 = vld [vmem:[#allocation10 + $0x100] sm:$0xff]  ;;  %v267_v12 = vld [vmem:[#allocation10 + $0x58] sm:$0xff]  ;;  %v802_v16 = vpack.c.bf16 %v262_v9, %v258_v4 }
  0x68   :  { %753 = vmatprep.subr.bf16.mxu0 %v1103_v0  ;;  %v293_v43 = vld [vmem:[#allocation10 + $0x128] sm:$0xff]  ;;  %v292_v49 = vld [vmem:[#allocation10 + $0x120] sm:$0xff]  ;;  %v271_v13 = vld [vmem:[#allocation10 + $0x78] sm:$0xff] }
  0x69   :  { %v784_v47 = vpack.c.bf16 %v293_v43, %v289_v42  ;;  %v111_v50 = vld [vmem:[#allocation5 + $0x68] sm:$0xff]  ;;  %v297_v51 = vld [vmem:[#allocation10 + $0x148] sm:$0xff]  ;;  %v786_v53 = vpack.c.bf16 %v292_v49, %v288_v48  ;;  %v97_v14 = vld [vmem:[#allocation2] sm:$0xff]  ;;  %v804_v21 = vpack.c.bf16 %v271_v13, %v267_v12 }
  0x6a   :  { %779 = vmatpush1.bf16.msra.mxu1 %v778_v34  ;;  %v301_v52 = vld [vmem:[#allocation10 + $0x168] sm:$0xff]  ;;  %v763_v54 = vpack.c.bf16 %v111_v50, %v110_v46  ;;  %v296_v57 = vld [vmem:[#allocation10 + $0x140] sm:$0xff]  ;;  %v266_v17 = vld [vmem:[#allocation10 + $0x50] sm:$0xff] }
  0x6b   :  { %755 = vmatpush3.bf16.msra.mxu0 %v754_v24  ;;  %781 = vmatprep.subr.bf16.mxu1 %v780_v38  ;;  %v112_v55 = vld [vmem:[#allocation5 + $0x70] sm:$0xff]  ;;  %v788_v56 = vpack.c.bf16 %v301_v52, %v297_v51  ;;  %v300_v58 = vld [vmem:[#allocation10 + $0x160] sm:$0xff]  ;;  %v270_v22 = vld [vmem:[#allocation10 + $0x70] sm:$0xff] }
  0x6c   :  { %756 = vmatprep.subr.bf16.mxu0 %v1103_v0  ;;  %v305_v60 = vld [vmem:[#allocation10 + $0x188] sm:$0xff]  ;;  %v790_v2 = vpack.c.bf16 %v300_v58, %v296_v57  ;;  %v766_v3 = vpack.c.bf16 %v113_v59, %v112_v55  ;;  %v304_v6 = vld [vmem:[#allocation10 + $0x180] sm:$0xff]  ;;  %v275_v24 = vld [vmem:[#allocation10 + $0x98] sm:$0xff]  ;;  %v806_v27 = vpack.c.bf16 %v270_v22, %v266_v17 }
  0x6d   :  { %v309_v61 = vld [vmem:[#allocation10 + $0x1a8] sm:$0xff]  ;;  %v308_v7 = vld [vmem:[#allocation10 + $0x1a0] sm:$0xff]  ;;  %v279_v25 = vld [vmem:[#allocation10 + $0xb8] sm:$0xff] }
  0x6e   :  { %783 = vmatpush1.bf16.msra.mxu1 %v782_v44  ;;  %v792_v5 = vpack.c.bf16 %v309_v61, %v305_v60  ;;  %v313_v10 = vld [vmem:[#allocation10 + $0x1c8] sm:$0xff]  ;;  %v794_v15 = vpack.c.bf16 %v308_v7, %v304_v6  ;;  %v312_v19 = vld [vmem:[#allocation10 + $0x1c0] sm:$0xff]  ;;  %v274_v28 = vld [vmem:[#allocation10 + $0x90] sm:$0xff]  ;;  %v808_v32 = vpack.c.bf16 %v279_v25, %v275_v24 }
  0x6f   :  { %758 = vmatpush3.bf16.msra.mxu0 %v757_v36  ;;  %785 = vmatprep.subr.bf16.mxu1 %v784_v47  ;;  %v317_v11 = vld [vmem:[#allocation10 + $0x1e8] sm:$0xff]  ;;  %v316_v20 = vld [vmem:[#allocation10 + $0x1e0] sm:$0xff]  ;;  %v278_v33 = vld [vmem:[#allocation10 + $0xb0] sm:$0xff] }
  0x70   :  { %759 = vmatprep.subr.bf16.mxu0 %v1103_v0  ;;  %v796_v18 = vpack.c.bf16 %v317_v11, %v313_v10  ;;  %v196_v23 = vld [vmem:[#allocation8 + $0x28] sm:$0xff]  ;;  %v798_v26 = vpack.c.bf16 %v316_v20, %v312_v19  ;;  %v191_v30 = vld [vmem:[#allocation8] sm:$0xff]  ;;  %v283_v36 = vld [vmem:[#allocation10 + $0xd8] sm:$0xff]  ;;  %v810_v40 = vpack.c.bf16 %v278_v33, %v274_v28 }
  0x71   :  { %v195_v31 = vld [vmem:[#allocation8 + $0x20] sm:$0xff]  ;;  %v200_v34 = vld [vmem:[#allocation8 + $0x48] sm:$0xff]  ;;  %v287_v37 = vld [vmem:[#allocation10 + $0xf8] sm:$0xff] }
  0x72   :  { %787 = vmatpush1.bf16.msra.mxu1 %v786_v53  ;;  %v204_v35 = vld [vmem:[#allocation8 + $0x68] sm:$0xff]  ;;  %v1238_v38 = vld [vmem:[%s1277_s3] sm:$0xff]  ;;  %v834_v39 = vpack.c.bf16 %v195_v31, %v191_v30  ;;  %v199_v43 = vld [vmem:[#allocation8 + $0x40] sm:$0xff] }
  0x73   :  { %761 = vmatpush3.bf16.msra.mxu0 %v760_v45  ;;  %789 = vmatprep.subr.bf16.mxu1 %v788_v56  ;;  %v282_v41 = vld [vmem:[#allocation10 + $0xd0] sm:$0xff]  ;;  %v836_v42 = vpack.c.bf16 %v204_v35, %v200_v34  ;;  %v203_v44 = vld [vmem:[#allocation8 + $0x60] sm:$0xff]  ;;  %v812_v45 = vpack.c.bf16 %v287_v37, %v283_v36  ;;  %v208_v47 = vld [vmem:[#allocation8 + $0x88] sm:$0xff] }
  0x74   :  { %762 = vmatprep.subr.bf16.mxu0 %v1103_v0  ;;  %v286_v46 = vld [vmem:[#allocation10 + $0xf0] sm:$0xff]  ;;  %v212_v48 = vld [vmem:[#allocation8 + $0xa8] sm:$0xff]  ;;  %v291_v49 = vld [vmem:[#allocation10 + $0x118] sm:$0xff]  ;;  %v838_v51 = vpack.c.bf16 %v203_v44, %v199_v43 }
  0x75   :  { %v295_v50 = vld [vmem:[#allocation10 + $0x138] sm:$0xff]  ;;  %v814_v52 = vpack.c.bf16 %v286_v46, %v282_v41  ;;  %v290_v53 = vld [vmem:[#allocation10 + $0x110] sm:$0xff]  ;;  %v207_v55 = vld [vmem:[#allocation8 + $0x80] sm:$0xff] }
  0x76   :  { %791 = vmatpush1.bf16.msra.mxu1 %v790_v2  ;;  %v211_v56 = vld [vmem:[#allocation8 + $0xa0] sm:$0xff]  ;;  %v816_v57 = vpack.c.bf16 %v295_v50, %v291_v49  ;;  %v294_v58 = vld [vmem:[#allocation10 + $0x130] sm:$0xff]  ;;  %v216_v59 = vld [vmem:[#allocation8 + $0xc8] sm:$0xff] }
  0x77   :  { %764 = vmatpush3.bf16.msra.mxu0 %v763_v54  ;;  %793 = vmatprep.subr.bf16.mxu1 %v792_v5  ;;  %v840_v54 = vpack.c.bf16 %v212_v48, %v208_v47  ;;  %v220_v60 = vld [vmem:[#allocation8 + $0xe8] sm:$0xff]  ;;  %v299_v61 = vld [vmem:[#allocation10 + $0x158] sm:$0xff]  ;;  %v842_v63 = vpack.c.bf16 %v211_v56, %v207_v55  ;;  %v818_v2 = vpack.c.bf16 %v294_v58, %v290_v53  ;;  %v215_v5 = vld [vmem:[#allocation8 + $0xc0] sm:$0xff] }
  0x78   :  { %765 = vmatprep.subr.bf16.mxu0 %v1103_v0  ;;  %v192_v0 = vld [vmem:[#allocation8 + $0x8] sm:$0xff]  ;;  %v303_v62 = vld [vmem:[#allocation10 + $0x178] sm:$0xff]  ;;  %v844_v4 = vpack.c.bf16 %v220_v60, %v216_v59  ;;  %v219_v6 = vld [vmem:[#allocation8 + $0xe0] sm:$0xff] }
  0x79   :  { %v832_v29 = vpack.c.bf16 %v196_v23, %v192_v0  ;;  %v820_v7 = vpack.c.bf16 %v303_v62, %v299_v61  ;;  %v224_v9 = vld [vmem:[#allocation8 + $0x108] sm:$0xff]  ;;  %v307_v11 = vld [vmem:[#allocation10 + $0x198] sm:$0xff]  ;;  %v846_v13 = vpack.c.bf16 %v219_v6, %v215_v5  ;;  %v223_v17 = vld [vmem:[#allocation8 + $0x100] sm:$0xff] }
  0x7a   :  { %795 = vmatpush1.bf16.msra.mxu1 %v794_v15  ;;  %v228_v10 = vld [vmem:[#allocation8 + $0x128] sm:$0xff]  ;;  %v311_v12 = vld [vmem:[#allocation10 + $0x1b8] sm:$0xff]  ;;  %v306_v15 = vld [vmem:[#allocation10 + $0x190] sm:$0xff] }
  0x7b   :  { %767 = vmatpush3.bf16.msra.mxu0 %v766_v3  ;;  %797 = vmatprep.subr.bf16.mxu1 %v796_v18  ;;  %v298_v3 = vld [vmem:[#allocation10 + $0x150] sm:$0xff]  ;;  %v227_v18 = vld [vmem:[#allocation8 + $0x120] sm:$0xff]  ;;  %v824_v19 = vpack.c.bf16 %v311_v12, %v307_v11  ;;  %v236_v22 = vld [vmem:[#allocation8 + $0x168] sm:$0xff] }
  0x7c   :  { %801 = vmatprep.subr.bf16.mxu0 %v800_v8  ;;  %v302_v8 = vld [vmem:[#allocation10 + $0x170] sm:$0xff]  ;;  %v315_v0 = vld [vmem:[#allocation10 + $0x1d8] sm:$0xff]  ;;  %v850_v24 = vpack.c.bf16 %v227_v18, %v223_v17  ;;  %v231_v28 = vld [vmem:[#allocation8 + $0x140] sm:$0xff] }
  0x7d   :  { %v310_v20 = vld [vmem:[#allocation10 + $0x1b0] sm:$0xff]  ;;  %v319_v23 = vld [vmem:[#allocation10 + $0x1f8] sm:$0xff]  ;;  %v244_v33 = vld [vmem:[#allocation8 + $0x1a8] sm:$0xff] }
  0x7e   :  { %742 = vmatmul.mubr.f32.vlgmr.msra.gmra.mrb[0].mxu0 %v97_v14  ;;  %799 = vmatpush1.bf16.msra.mxu1 %v798_v26  ;;  %v822_v14 = vpack.c.bf16 %v302_v8, %v298_v3  ;;  %v826_v25 = vpack.c.bf16 %v310_v20, %v306_v15  ;;  %v314_v26 = vld [vmem:[#allocation10 + $0x1d0] sm:$0xff]  ;;  %v828_v30 = vpack.c.bf16 %v319_v23, %v315_v0  ;;  %v194_v34 = vld [vmem:[#allocation8 + $0x18] sm:$0xff]  ;;  %v239_v41 = vld [vmem:[#allocation8 + $0x180] sm:$0xff] }
  0x7f   :  { %803 = vmatpush1.bf16.msra.mxu0 %v802_v16  ;;  %455 = vmatprep.mubr.f32.mxu0 %v1105_v1  ;;  %v848_v16 = vpack.c.bf16 %v228_v10, %v224_v9  ;;  %v318_v31 = vld [vmem:[#allocation10 + $0x1f0] sm:$0xff]  ;;  %v198_v35 = vld [vmem:[#allocation8 + $0x38] sm:$0xff]  ;;  %v252_v46 = vld [vmem:[#allocation8 + $0x1e8] sm:$0xff] }
  0x80   :  { %805 = vmatprep.subr.bf16.mxu0 %v804_v21  ;;  %833 = vmatprep.subr.bf16.mxu1 %v832_v29  ;;  %v232_v21 = vld [vmem:[#allocation8 + $0x148] sm:$0xff]  ;;  %v235_v29 = vld [vmem:[#allocation8 + $0x160] sm:$0xff]  ;;  %v830_v37 = vpack.c.bf16 %v318_v31, %v314_v26  ;;  %v864_v43 = vpack.c.bf16 %v198_v35, %v194_v34  ;;  %v197_v44 = vld [vmem:[#allocation8 + $0x30] sm:$0xff]  ;;  %v606_v34 = vlaneseq }
  0x81   :  { %385 = vmatmul.mubr.f32.vlgmr.msra.gmra.mrb[0].mxu1 %v1238_v38  ;;  %v854_v36 = vpack.c.bf16 %v235_v29, %v231_v28  ;;  %v202_v47 = vld [vmem:[#allocation8 + $0x58] sm:$0xff]  ;;  %v201_v53 = vld [vmem:[#allocation8 + $0x50] sm:$0xff] }
  0x82   :  { %835 = vmatpush1.bf16.msra.mxu1 %v834_v39  ;;  %526 = vmatprep.mubr.f32.mxu1 %v1105_v1  ;;  %v193_v39 = vld [vmem:[#allocation8 + $0x10] sm:$0xff]  ;;  %v206_v48 = vld [vmem:[#allocation8 + $0x78] sm:$0xff]  ;;  %v607_v35 = vshrl.u32 %v606_v34, 7 }
  0x83   :  { %807 = vmatpush1.bf16.msra.mxu0 %v806_v27  ;;  %837 = vmatprep.subr.bf16.mxu1 %v836_v42  ;;  %v852_v27 = vpack.c.bf16 %v236_v22, %v232_v21  ;;  %v243_v42 = vld [vmem:[#allocation8 + $0x1a0] sm:$0xff]  ;;  %v866_v50 = vpack.c.bf16 %v197_v44, %v193_v39  ;;  %v210_v55 = vld [vmem:[#allocation8 + $0x98] sm:$0xff]  ;;  %v209_v59 = vld [vmem:[#allocation8 + $0x90] sm:$0xff] }
  0x84   :  { %809 = vmatprep.subr.bf16.mxu0 %v808_v32  ;;  %v240_v32 = vld [vmem:[#allocation8 + $0x188] sm:$0xff]  ;;  %v858_v49 = vpack.c.bf16 %v243_v42, %v239_v41  ;;  %v214_v56 = vld [vmem:[#allocation8 + $0xb8] sm:$0xff]  ;;  %v213_v60 = vld [vmem:[#allocation8 + $0xb0] sm:$0xff]  ;;  %v612_v39 = vsub.s32 1, %v607_v35  ;;  %v620_v44 = vsub.s32 3, %v607_v35 }
  0x85   :  { %v872_v58 = vpack.c.bf16 %v214_v56, %v210_v55  ;;  %v218_v61 = vld [vmem:[#allocation8 + $0xd8] sm:$0xff]  ;;  %v217_v3 = vld [vmem:[#allocation8 + $0xd0] sm:$0xff] }
  0x86   :  { %839 = vmatpush1.bf16.msra.mxu1 %v838_v51  ;;  %v222_v62 = vld [vmem:[#allocation8 + $0xf8] sm:$0xff]  ;;  %v225_v8 = vld [vmem:[#allocation8 + $0x110] sm:$0xff] }
  0x87   :  { %811 = vmatpush1.bf16.msra.mxu0 %v810_v40  ;;  %841 = vmatprep.subr.bf16.mxu1 %v840_v54  ;;  %v856_v40 = vpack.c.bf16 %v244_v33, %v240_v32  ;;  %v205_v54 = vld [vmem:[#allocation8 + $0x70] sm:$0xff]  ;;  %v226_v5 = vld [vmem:[#allocation8 + $0x118] sm:$0xff] }
  0x88   :  { %813 = vmatprep.subr.bf16.mxu0 %v812_v45  ;;  %v248_v45 = vld [vmem:[#allocation8 + $0x1c8] sm:$0xff]  ;;  %v229_v9 = vld [vmem:[#allocation8 + $0x130] sm:$0xff]  ;;  %v234_v10 = vld [vmem:[#allocation8 + $0x158] sm:$0xff] }
  0x89   :  { %v860_v51 = vpack.c.bf16 %v252_v46, %v248_v45  ;;  %v238_v11 = vld [vmem:[#allocation8 + $0x178] sm:$0xff]  ;;  %v245_v20 = vld [vmem:[#allocation8 + $0x1b0] sm:$0xff] }
  0x8a   :  { %843 = vmatpush1.bf16.msra.mxu1 %v842_v63  ;;  %v874_v63 = vpack.c.bf16 %v213_v60, %v209_v59  ;;  %v884_v12 = vpack.c.bf16 %v238_v11, %v234_v10  ;;  %v242_v15 = vld [vmem:[#allocation8 + $0x198] sm:$0xff]  ;;  %v249_v26 = vld [vmem:[#allocation8 + $0x1d0] sm:$0xff] }
  0x8b   :  { %815 = vmatpush1.bf16.msra.mxu0 %v814_v52  ;;  %845 = vmatprep.subr.bf16.mxu1 %v844_v4  ;;  %v868_v52 = vpack.c.bf16 %v206_v48, %v202_v47  ;;  %v221_v4 = vld [vmem:[#allocation8 + $0xf0] sm:$0xff]  ;;  %v250_v21 = vld [vmem:[#allocation8 + $0x1d8] sm:$0xff] }
  0x8c   :  { %817 = vmatprep.subr.bf16.mxu0 %v816_v57  ;;  %v870_v57 = vpack.c.bf16 %v205_v54, %v201_v53  ;;  %v878_v6 = vpack.c.bf16 %v221_v4, %v217_v3  ;;  %v254_v22 = vld [vmem:[#allocation8 + $0x1f8] sm:$0xff]  ;;  %v253_v28 = vld [vmem:[#allocation8 + $0x1f0] sm:$0xff] }
  0x8d   :  { %v892_v23 = vpack.c.bf16 %v254_v22, %v250_v21  ;;  %v894_v29 = vpack.c.bf16 %v253_v28, %v249_v26 }
  0x8e   :  { %847 = vmatpush1.bf16.msra.mxu1 %v846_v13  ;;  %v233_v13 = vld [vmem:[#allocation8 + $0x150] sm:$0xff] }
  0x8f   :  { %819 = vmatpush1.bf16.msra.mxu0 %v818_v2  ;;  %849 = vmatprep.subr.bf16.mxu1 %v848_v16  ;;  %v876_v2 = vpack.c.bf16 %v222_v62, %v218_v61  ;;  %v246_v16 = vld [vmem:[#allocation8 + $0x1b8] sm:$0xff] }
  0x90   :  { %821 = vmatprep.subr.bf16.mxu0 %v820_v7  ;;  %v888_v18 = vpack.c.bf16 %v246_v16, %v242_v15 }
  0x92   :  { %851 = vmatpush1.bf16.msra.mxu1 %v850_v24  ;;  %v247_v24 = vld [vmem:[#allocation8 + $0x1c0] sm:$0xff] }
  0x93   :  { %823 = vmatpush1.bf16.msra.mxu0 %v822_v14  ;;  %853 = vmatprep.subr.bf16.mxu1 %v852_v27  ;;  %v237_v14 = vld [vmem:[#allocation8 + $0x170] sm:$0xff] }
  0x94   :  { %825 = vmatprep.subr.bf16.mxu0 %v824_v19  ;;  %v886_v17 = vpack.c.bf16 %v237_v14, %v233_v13  ;;  %v241_v19 = vld [vmem:[#allocation8 + $0x190] sm:$0xff] }
  0x95   :  { %v890_v0 = vpack.c.bf16 %v245_v20, %v241_v19 }
  0x96   :  { %855 = vmatpush1.bf16.msra.mxu1 %v854_v36  ;;  %v608_v36 = vsub.s32 0, %v607_v35 }
  0x97   :  { %827 = vmatpush1.bf16.msra.mxu0 %v826_v25  ;;  %857 = vmatprep.subr.bf16.mxu1 %v856_v40  ;;  %v251_v25 = vld [vmem:[#allocation8 + $0x1e0] sm:$0xff] }
  0x98   :  { %829 = vmatprep.subr.bf16.mxu0 %v828_v30  ;;  %v862_v27 = vpack.c.bf16 %v251_v25, %v247_v24  ;;  %v688_v30 = vld [vmem:[%s1276_s2] ss:$0 sm:$0xff]  ;;  %s1106_s2 = smov [#allocation12]  }
  0x9a   :  { %859 = vmatpush1.bf16.msra.mxu1 %v858_v49 }
  0x9b   :  { %831 = vmatpush1.bf16.msra.mxu0 %v830_v37  ;;  %861 = vmatprep.subr.bf16.mxu1 %v860_v51  ;;  %v604_v37 = vld [vmem:[%s1281_s7] sm:$0xf]  ;;  %s673_s7 = sshll.u32 %s1106_s2, 4  ;;  %s674_s7 = int_to_ptr.vmem [resolvable:$true] %s673_s7 }
  0x9c   :  { %865 = vmatprep.subr.bf16.mxu0 %v864_v43  ;;  %v609_v40 = vrot.slane %v604_v37, %v608_v36  ;;  %v613_v41 = vrot.slane %v604_v37, %v612_v39  ;;  %v621_v51 = vrot.slane %v604_v37, %v620_v44  ;;  %s1040_s29 = scalar_lea.vmem %s674_s7, 128  ;;  %p1045_p13 = scmp.lt.s32.totalorder %s674_s7, %s674_s7 }
  0x9d   :  { %p1041_p12 = scmp.ne.s32.totalorder %s674_s7, %s1040_s29  ;;  %p1046_p0 = scmp.lt.s32.totalorder %s1040_s29, %s1040_s29 }
  0x9e   :  { %456 = vmatmul.mubr.f32.vlgmr.msra.gmra.mrb[2].mxu0 %v1238_v38  ;;  %v230_v38 = vld [vmem:[#allocation8 + $0x138] sm:$0xff]  ;;  %863 = vmatpush1.bf16.msra.mxu1 %v862_v27 }
  0x9f   :  { %867 = vmatpush1.bf16.msra.mxu0 %v866_v50  ;;  %597 = vmatprep.mubr.f32.mxu0 %v1105_v1  ;;  %v880_v7 = vpack.c.bf16 %v230_v38, %v226_v5  ;;  %v882_v1 = vpack.c.bf16 %v229_v9, %v225_v8  ;;  %p1047_p1 = por %p1046_p0, %p1045_p13 }
  0xa0   :  { %869 = vmatprep.subr.bf16.mxu0 %v868_v52  ;;  %v616_v52 = vsub.s32 2, %v607_v35 }
  0xa1   :  { %p1048_p2 = pnand %p1047_p1, %p1041_p12 }
  0xa2   :  { %v617_v54 = vrot.slane %v604_v37, %v616_v52 }
  0xa3   :  { %871 = vmatpush1.bf16.msra.mxu0 %v870_v57 }
  0xa4   :  { %873 = vmatprep.subr.bf16.mxu0 %v872_v58 }
  0xa7   :  { %875 = vmatpush1.bf16.msra.mxu0 %v874_v63  ;;  %v649_v63 = vld [vmem:[#allocation7] sm:$0xff] }
  0xa8   :  { %877 = vmatprep.subr.bf16.mxu0 %v876_v2 }
  0xab   :  { %879 = vmatpush1.bf16.msra.mxu0 %v878_v6 }
  0xac   :  { %881 = vmatprep.subr.bf16.mxu0 %v880_v7 }
  0xaf   :  { %883 = vmatpush1.bf16.msra.mxu0 %v882_v1 }
  0xb0   :  { %885 = vmatprep.subr.bf16.mxu0 %v884_v12 }
  0xb3   :  { %887 = vmatpush1.bf16.msra.mxu0 %v886_v17 }
  0xb4   :  { %889 = vmatprep.subr.bf16.mxu0 %v888_v18 }
  0xb7   :  { %891 = vmatpush1.bf16.msra.mxu0 %v890_v0 }
  0xb8   :  { %893 = vmatprep.subr.bf16.mxu0 %v892_v23 }
  0xbb   :  { %895 = vmatpush1.bf16.msra.mxu0 %v894_v29 }
 0x151   :  { %v187_v31 = vpop.f32.mrb[0].mxu0 }
 0x152   :  { %v188_v32 = vadd.f32 %v688_v30, %v187_v31  ;;  %v743_v33 = vpop.f32.mrb[1].mxu0 }
 0x154   :  { %527 = vmatmul.mubr.f32.vlgmr.msra.gmra.mrb[0].mxu1 %v188_v32  ;;  %598 = vmatmul.mubr.f32.vlgmr.msra.gmra.mrb[2].mxu0 %v188_v32 }
 0x227   :  { %v528_v42 = vpop.f32.mrb[0].mxu1  ;;  %v599_v43 = vpop.f32.mrb[2].mxu0 }
 0x228   :  { %v626_v45 = vadd.f32 %v609_v40, %v528_v42  ;;  %v530_v46 = vpop.f32.mrb[1].mxu1  ;;  %v601_v47 = vpop.f32.mrb[3].mxu0  ;;  %v628_v56 = vadd.f32 %v617_v54, %v599_v43 }
 0x229   :  { %v627_v48 = vadd.f32 %v613_v41, %v530_v46  ;;  %v629_v53 = vadd.f32 %v621_v51, %v601_v47 }
 0x22a   :  { %v689_v49 = vmul.f32 -1.442695, %v626_v45 }
 0x22b   :  { %v690_v50 = vmul.f32 -1.442695, %v627_v48  ;;  %v691_v55 = vmul.f32 -1.442695, %v629_v53 }
 0x22c   :  { %914 = vpow2.f32 %v689_v49 }
 0x22d   :  { %916 = vpow2.f32 %v690_v50 }
 0x22e   :  { %918 = vpow2.f32 %v691_v55 }
 0x22f   :  { %920 = vtanh.f32 %v628_v56 }
 0x236   :  { %v915_v57 = vpop.eup %914 }
 0x237   :  { %v917_v58 = vpop.eup %916  ;;  %v633_v59 = vadd.f32 1.0, %v915_v57 }
 0x238   :  { %v639_v60 = vadd.f32 1.0, %v917_v58  ;;  %v919_v61 = vpop.eup %918 }
 0x239   :  { %922 = vrcp.f32 %v633_v59  ;;  %v921_v62 = vpop.eup %920  ;;  %v646_v5 = vadd.f32 1.0, %v919_v61 }
 0x23a   :  { %924 = vrcp.f32 %v639_v60 }
 0x23b   :  { %926 = vrcp.f32 %v646_v5 }
 0x243   :  { %v923_v2 = vpop.eup %922 }
 0x244   :  { %v925_v3 = vpop.eup %924  ;;  %v651_v4 = vmul.f32 %v923_v2, %v921_v62 }
 0x245   :  { %v650_v38 = vmul.f32 %v925_v3, %v649_v63 }
 0x247   :  { %v652_v6 = vadd.f32 %v651_v4, %v650_v38 }
 0x249   :  { %928 = vtanh.f32 %v652_v6  ;;  %656 = vst [vmem:[#allocation12] sm:$0xff] %v652_v6 }
 0x24a   :  { %1051 = shalt.err (!%p1048_p2)
}
 0x24b   :  { %s1052_s12 = scalar_lea.hbm %s1283_s9, 128 }
 0x24c   :  { %p1053_p3 = scmp.ne.s32.totalorder %s1283_s9, %s1052_s12  ;;  %p1056_p4 = scmp.lt.u32.totalorder %s1052_s12, %s1283_s9 }
 0x24e   :  { %p1058_p5 = pnand %p1056_p4, %p1053_p3 }
 0x250   :  { %1061 = shalt.err (!%p1058_p5)
}
 0x251   :  { %676 = dma.vmem_to_hbm [thread:$0]  %s674_s7, 128, %s1283_s9, [#allocation13]   ;;  %v927_v7 = vpop.eup %926 }
 0x252   :  { %s1107_s19 = smov [#allocation11]  }
 0x253   :  { %s663_s20 = sshll.u32 %s1107_s19, 4  ;;  %v929_v8 = vpop.eup %928  ;;  %s664_s20 = int_to_ptr.vmem [resolvable:$true] %s663_s20 }
 0x254   :  { %v654_v9 = vmul.f32 %v929_v8, %v927_v7  ;;  %s1062_s21 = scalar_lea.vmem %s664_s20, 128  ;;  %p1067_p7 = scmp.lt.s32.totalorder %s664_s20, %s664_s20 }
 0x255   :  { %p1063_p6 = scmp.ne.s32.totalorder %s664_s20, %s1062_s21  ;;  %p1068_p8 = scmp.lt.s32.totalorder %s1062_s21, %s1062_s21 }
 0x256   :  { %655 = vst [vmem:[#allocation11] sm:$0xff] %v654_v9 }
 0x257   :  { %p1069_p9 = por %p1068_p8, %p1067_p7 }
 0x259   :  { %p1070_p10 = pnand %p1069_p9, %p1063_p6 }
 0x25b   :  { %1073 = shalt.err (!%p1070_p10)
}
 0x25c   :  { %s1074_s25 = scalar_lea.hbm %s1282_s8, 128 }
 0x25d   :  { %p1075_p11 = scmp.ne.s32.totalorder %s1282_s8, %s1074_s25  ;;  %p1078_p12 = scmp.lt.u32.totalorder %s1074_s25, %s1282_s8 }
 0x25f   :  { %p1080_p13 = pnand %p1078_p12, %p1075_p11 }
 0x261   :  { %1083 = shalt.err (!%p1080_p13)
}
 0x262   :  { %666 = dma.vmem_to_hbm [thread:$0]  %s664_s20, 128, %s1282_s8, [#allocation4]  }
 0x263   :  { %1090 = dma.done.wait [#allocation4], 128  }
 0x264   :  { %1091 = vsyncadd [#allocation4], 4294967168 }
 0x265   :  { %1092 = dma.done.wait [#allocation13], 128  }
 0x266   :  { %1093 = vsyncadd [#allocation13], 4294967168 }
 0x267   :  { %683 = vsyncpa [#allocation3], 1 }
 0x268   :  { %684 = vsyncpa [#allocation6], 1 }
 0x269   :  { %685 = vsyncpa [#allocation9], 1 }
 0x26a   :  { %686 = vsyncpa [#allocation4], 1 }
 0x26b   :  { %687 = vsyncpa [#allocation13], 1 }

</bundles_post_ra>
